<compile_context>
chip_gen: v6e
topology: v6e:2x2x1
jax: 0.10.0
libtpu: 0.0.40
codegen_flags: <defaults>
</compile_context>

<pallas_src>
import jax
import jax.numpy as jnp
import numpy as np
from jax.experimental import pallas as pl
from jax.experimental.pallas import tpu as pltpu


# ----------------------------------------------------------------------------
# Pallas kernel: fused  fc1 / fc2 / fc3 / sigmoid-attention / 1x1-conv / gate
# All operands are channels-major; the points axis (tn) is the lane axis.
# ----------------------------------------------------------------------------
def ia_layer_kernel(img_ref, point_ref,
                    bn1_scale_ref, bn1_bias_ref,   # BN over ic (folded), (ic,1)
                    w1_ref, w2_ref, b12_ref,       # fc1 W (rc,ic), fc2 W (rc,pc), b1+b2 (rc,1)
                    w3_ref, b3_ref,                # fc3 W (rc,1), fc3 bias (1,1)
                    wc_ref, bc_ref,                # conv W (pc,ic) / bias (pc,1), BN folded in
                    out_ref, att_ref):
    x = img_ref[...].astype(jnp.float32)        # (ic, tn)
    p = point_ref[...].astype(jnp.float32)      # (pc, tn)

    # fc1 = BN(ic) -> ReLU -> Linear(ic, rc)   (bias folded into b12)
    xb = jnp.maximum(x * bn1_scale_ref[...] + bn1_bias_ref[...], 0.0)      # (ic, tn)
    ri = jnp.dot(w1_ref[...], xb, preferred_element_type=jnp.float32)      # (rc, tn)

    # fc2 = Linear(pc, rc)                     (bias folded into b12)
    rp = jnp.dot(w2_ref[...], p, preferred_element_type=jnp.float32)       # (rc, tn)

    # att = sigmoid(fc3(tanh(ri + rp)))  -- fc3 as VPU mul + small sublane reduce.
    h = jnp.tanh(ri + rp + b12_ref[...])                                   # (rc, tn)
    att = jax.nn.sigmoid(
        jnp.sum(h * w3_ref[...], axis=0, keepdims=True) + b3_ref[...])     # (1, tn)

    # conv1 = Conv1d(ic, pc, k=1) -> BN(pc) -> ReLU  (BN folded into wc/bc)
    conv = jnp.dot(wc_ref[...], x, preferred_element_type=jnp.float32) + bc_ref[...]
    conv = jnp.maximum(conv, 0.0)                                          # (pc, tn)

    # Lane-dense stores, already in the (pc, N) output layout -- no transposes.
    out_ref[...] = (conv * att).astype(out_ref.dtype)
    att_ref[...] = att.astype(att_ref.dtype)


# ----------------------------------------------------------------------------
# Wrapper
# ----------------------------------------------------------------------------
def ia_layer(img_feats_cm, point_feats_cm, params, *, tn=4096, return_att=False):
    """Channels-major IA_Layer forward.

    img_feats_cm:   (ic, N)  == PyTorch img_feats.T  (producer-native layout)
    point_feats_cm: (pc, N)  == PyTorch point_feats.T
    returns: (out (1, pc, N), att (1, 1, N) | None) -- same as the PyTorch module.
    """
    ic, N = img_feats_cm.shape
    pc, _ = point_feats_cm.shape
    rc = params["w1"].shape[0]

    # ---- fold parameters (wrapper-side, one-time) -----------------------------
    wc_f = params["wc"] * params["bnc_scale"]                        # (pc, ic)
    bc_f = params["bc"] * params["bnc_scale"] + params["bnc_bias"]   # (pc, 1)
    b12 = params["b1"] + params["b2"]                                # (rc, 1)

    # ---- pick tile size (no padding; ragged tail handled by Pallas masking) ---
    LANE = 128
    tn = max(LANE, (int(tn) // LANE) * LANE)
    # keep >= 2 grid blocks so both v7x TensorCores get work (no-op on v5e/v6e)
    if N > LANE:
        tn = min(tn, max(LANE, (N // 2 // LANE) * LANE))
    # fit double-buffered tiles + intermediates + constants in a VMEM budget
    VMEM_BUDGET = 40 * 1024 * 1024
    per_lane_bytes = 4 * (2 * (ic + 2 * pc + 1) + 3 * rc + pc)
    const_bytes = 2 * 4 * (rc * ic + rc * pc + pc * ic + 2 * ic + 4 * rc + 2 * pc + 1)
    tn_fit = max(LANE, ((max(VMEM_BUDGET - const_bytes, per_lane_bytes * LANE))
                        // per_lane_bytes) // LANE * LANE)
    tn = min(tn, tn_fit)

    grid = (pl.cdiv(N, tn),)

    def const(shape):
        return pl.BlockSpec(shape, lambda i: (0, 0))

    out, att = pl.pallas_call(
        ia_layer_kernel,
        out_shape=(jax.ShapeDtypeStruct((pc, N), jnp.float32),   # gated conv output
                   jax.ShapeDtypeStruct((1, N), jnp.float32)),   # attention
        grid=grid,
        in_specs=[
            pl.BlockSpec((ic, tn), lambda i: (0, i)),   # img tile (channels-major)
            pl.BlockSpec((pc, tn), lambda i: (0, i)),   # point tile (channels-major)
            const((ic, 1)), const((ic, 1)),             # bn1 scale / bias
            const((rc, ic)),                            # fc1 W
            const((rc, pc)),                            # fc2 W
            const((rc, 1)),                             # b1 + b2
            const((rc, 1)), const((1, 1)),              # fc3 W / b3
            const((pc, ic)), const((pc, 1)),            # folded conv W / bias
        ],
        out_specs=(pl.BlockSpec((pc, tn), lambda i: (0, i)),
                   pl.BlockSpec((1, tn), lambda i: (0, i))),
        compiler_params=pltpu.CompilerParams(
            dimension_semantics=("parallel",),
            vmem_limit_bytes=48 * 1024 * 1024),
    )(img_feats_cm, point_feats_cm,
      params["bn1_scale"], params["bn1_bias"],
      params["w1"], params["w2"], b12,
      params["w3"], params["b3"],
      wc_f, bc_f)

    out_bcn = out[None]                 # (1, pc, N) -- matches conv1 output layout
    att_out = att.reshape(1, 1, N)      # matches att.view(1, 1, -1)
    return (out_bcn, att_out) if return_att else (out_bcn, None)


# ----------------------------------------------------------------------------
# Deterministic parameter construction (synthetic, no checkpoint)
# ----------------------------------------------------------------------------
def make_params(key, ic, pc, eps=1e-5):
    rc = pc // 4
    ks = jax.random.split(key, 16)

    def bn_fold(kg, kb, km, kv, c):
        gamma = 1.0 + 0.1 * jax.random.normal(kg, (c,), jnp.float32)
        beta = 0.1 * jax.random.normal(kb, (c,), jnp.float32)
        mean = 0.05 * jax.random.normal(km, (c,), jnp.float32)
        var = jnp.abs(1.0 + 0.1 * jax.random.normal(kv, (c,), jnp.float32))
        scale = gamma / jnp.sqrt(var + eps)
        bias = beta - mean * scale
        return scale.reshape(c, 1), bias.reshape(c, 1)

    bn1_scale, bn1_bias = bn_fold(ks[0], ks[1], ks[2], ks[3], ic)
    bnc_scale, bnc_bias = bn_fold(ks[4], ks[5], ks[6], ks[7], pc)

    return dict(
        bn1_scale=bn1_scale, bn1_bias=bn1_bias,
        w1=0.05 * jax.random.normal(ks[8], (rc, ic), jnp.float32),    # Linear(ic, rc).weight
        b1=0.05 * jax.random.normal(ks[9], (rc, 1), jnp.float32),
        w2=0.05 * jax.random.normal(ks[10], (rc, pc), jnp.float32),   # Linear(pc, rc).weight
        b2=0.05 * jax.random.normal(ks[11], (rc, 1), jnp.float32),
        w3=0.05 * jax.random.normal(ks[12], (rc, 1), jnp.float32),    # Linear(rc, 1).weight.T
        b3=0.05 * jax.random.normal(ks[13], (1, 1), jnp.float32),
        wc=0.05 * jax.random.normal(ks[14], (pc, ic), jnp.float32),   # Conv1d(ic,pc,1).weight
        bc=0.05 * jax.random.normal(ks[15], (pc, 1), jnp.float32),
        bnc_scale=bnc_scale, bnc_bias=bnc_bias,
    )


# Pure-JAX reference (channels-major; mirrors the PyTorch forward in eval mode)
def ia_layer_ref(img_cm, point_cm, p):
    xb = jnp.maximum(img_cm * p["bn1_scale"] + p["bn1_bias"], 0.0)       # BN(ic)+ReLU
    ri = p["w1"] @ xb + p["b1"]                                          # fc1
    rp = p["w2"] @ point_cm + p["b2"]                                    # fc2
    att = jax.nn.sigmoid(p["w3"].T @ jnp.tanh(ri + rp) + p["b3"])        # fc3+sigmoid, (1,N)
    conv = p["wc"] @ img_cm + p["bc"]                                    # Conv1d(ic,pc,1)
    conv = jnp.maximum(conv * p["bnc_scale"] + p["bnc_bias"], 0.0)       # BN(pc)+ReLU
    out = (conv * att)[None]                                             # (1, pc, N)
    return out, att.reshape(1, 1, -1)


if __name__ == "__main__":
    ic, pc = 64, 96                  # channels = (ic, pc) like the first list entry
    key = jax.random.PRNGKey(0)

    for N in (256, 200):             # 200 exercises the in-kernel ragged-tail path
        k_img, k_pt, k_par = jax.random.split(jax.random.fold_in(key, N), 3)
        # channels-major inputs (== PyTorch (N, C) inputs transposed)
        img_cm = jax.random.normal(k_img, (ic, N), jnp.float32)
        point_cm = jax.random.normal(k_pt, (pc, N), jnp.float32)
        params = make_params(k_par, ic, pc)

        out, att = ia_layer(img_cm, point_cm, params, return_att=True)
        out = jax.block_until_ready(out)
        att = jax.block_until_ready(att)

        out_ref, att_ref = ia_layer_ref(img_cm, point_cm, params)
        np.testing.assert_allclose(np.asarray(out), np.asarray(out_ref),
                                   rtol=1e-5, atol=1e-5)
        np.testing.assert_allclose(np.asarray(att), np.asarray(att_ref),
                                   rtol=1e-5, atol=1e-5)

    print("KERNEL_OK")
</pallas_src>

<mosaic_0001>
module attributes {stable_mosaic.version = 11 : i64} {
  func.func @ia_layer_kernel(%arg0: i32, %arg1: memref<64x128xf32, #tpu.memory_space<vmem>>, %arg2: memref<96x128xf32, #tpu.memory_space<vmem>>, %arg3: memref<64x1xf32, #tpu.memory_space<vmem>>, %arg4: memref<64x1xf32, #tpu.memory_space<vmem>>, %arg5: memref<24x64xf32, #tpu.memory_space<vmem>>, %arg6: memref<24x96xf32, #tpu.memory_space<vmem>>, %arg7: memref<24x1xf32, #tpu.memory_space<vmem>>, %arg8: memref<24x1xf32, #tpu.memory_space<vmem>>, %arg9: memref<1x1xf32, #tpu.memory_space<vmem>>, %arg10: memref<96x64xf32, #tpu.memory_space<vmem>>, %arg11: memref<96x1xf32, #tpu.memory_space<vmem>>, %arg12: memref<96x128xf32, #tpu.memory_space<vmem>>, %arg13: memref<1x128xf32, #tpu.memory_space<vmem>>) attributes {dimension_semantics = [#tpu.dimension_semantics<parallel>], iteration_bounds = array<i64: 2>, scalar_prefetch = 0 : i64, scratch_operands = 0 : i64, tpu.core_type = #tpu.core_type<tc>, window_params = [{transform_indices = @transform_0, window_bounds = array<i64: 64, 128>}, {transform_indices = @transform_1, window_bounds = array<i64: 96, 128>}, {pipeline_mode = #tpu.pipeline_mode<synchronous>, transform_indices = @transform_2, window_bounds = array<i64: 64, 1>}, {pipeline_mode = #tpu.pipeline_mode<synchronous>, transform_indices = @transform_3, window_bounds = array<i64: 64, 1>}, {pipeline_mode = #tpu.pipeline_mode<synchronous>, transform_indices = @transform_4, window_bounds = array<i64: 24, 64>}, {pipeline_mode = #tpu.pipeline_mode<synchronous>, transform_indices = @transform_5, window_bounds = array<i64: 24, 96>}, {pipeline_mode = #tpu.pipeline_mode<synchronous>, transform_indices = @transform_6, window_bounds = array<i64: 24, 1>}, {pipeline_mode = #tpu.pipeline_mode<synchronous>, transform_indices = @transform_7, window_bounds = array<i64: 24, 1>}, {pipeline_mode = #tpu.pipeline_mode<synchronous>, transform_indices = @transform_8, window_bounds = array<i64: 1, 1>}, {pipeline_mode = #tpu.pipeline_mode<synchronous>, transform_indices = @transform_9, window_bounds = array<i64: 96, 64>}, {pipeline_mode = #tpu.pipeline_mode<synchronous>, transform_indices = @transform_10, window_bounds = array<i64: 96, 1>}, {transform_indices = @transform_11, window_bounds = array<i64: 96, 128>}, {transform_indices = @transform_12, window_bounds = array<i64: 1, 128>}]} {
    %c0 = arith.constant 0 : index
    %c0_0 = arith.constant 0 : index
    %0 = vector.load %arg1[%c0, %c0_0] : memref<64x128xf32, #tpu.memory_space<vmem>>, vector<64x128xf32>
    %c0_1 = arith.constant 0 : index
    %c0_2 = arith.constant 0 : index
    %1 = vector.load %arg2[%c0_1, %c0_2] : memref<96x128xf32, #tpu.memory_space<vmem>>, vector<96x128xf32>
    %c0_3 = arith.constant 0 : index
    %c0_4 = arith.constant 0 : index
    %2 = vector.load %arg3[%c0_3, %c0_4] : memref<64x1xf32, #tpu.memory_space<vmem>>, vector<64x1xf32>
    %3 = vector.broadcast %2 : vector<64x1xf32> to vector<64x128xf32>
    %4 = arith.mulf %0, %3 : vector<64x128xf32>
    %c0_5 = arith.constant 0 : index
    %c0_6 = arith.constant 0 : index
    %5 = vector.load %arg4[%c0_5, %c0_6] : memref<64x1xf32, #tpu.memory_space<vmem>>, vector<64x1xf32>
    %6 = vector.broadcast %5 : vector<64x1xf32> to vector<64x128xf32>
    %7 = arith.addf %4, %6 : vector<64x128xf32>
    %cst = arith.constant 0.000000e+00 : f32
    %8 = vector.broadcast %cst : f32 to vector<64x128xf32>
    %9 = arith.maximumf %7, %8 : vector<64x128xf32>
    %c0_7 = arith.constant 0 : index
    %c0_8 = arith.constant 0 : index
    %10 = vector.load %arg5[%c0_7, %c0_8] : memref<24x64xf32, #tpu.memory_space<vmem>>, vector<24x64xf32>
    %cst_9 = arith.constant dense<0.000000e+00> : vector<24x128xf32>
    %11 = tpu.matmul %10, %9, %cst_9 {dimension_numbers = #tpu.dot_dimension_numbers<[1], [0], [0], [1], [0, 0, 1, 1], [], []>} : vector<24x64xf32>, vector<64x128xf32>, vector<24x128xf32> -> vector<24x128xf32>
    %c0_10 = arith.constant 0 : index
    %c0_11 = arith.constant 0 : index
    %12 = vector.load %arg6[%c0_10, %c0_11] : memref<24x96xf32, #tpu.memory_space<vmem>>, vector<24x96xf32>
    %cst_12 = arith.constant dense<0.000000e+00> : vector<24x128xf32>
    %13 = tpu.matmul %12, %1, %cst_12 {dimension_numbers = #tpu.dot_dimension_numbers<[1], [0], [0], [1], [0, 0, 1, 1], [], []>} : vector<24x96xf32>, vector<96x128xf32>, vector<24x128xf32> -> vector<24x128xf32>
    %14 = arith.addf %11, %13 : vector<24x128xf32>
    %c0_13 = arith.constant 0 : index
    %c0_14 = arith.constant 0 : index
    %15 = vector.load %arg7[%c0_13, %c0_14] : memref<24x1xf32, #tpu.memory_space<vmem>>, vector<24x1xf32>
    %16 = vector.broadcast %15 : vector<24x1xf32> to vector<24x128xf32>
    %17 = arith.addf %14, %16 : vector<24x128xf32>
    %18 = math.tanh %17 : vector<24x128xf32>
    %c0_15 = arith.constant 0 : index
    %c0_16 = arith.constant 0 : index
    %19 = vector.load %arg8[%c0_15, %c0_16] : memref<24x1xf32, #tpu.memory_space<vmem>>, vector<24x1xf32>
    %20 = vector.broadcast %19 : vector<24x1xf32> to vector<24x128xf32>
    %21 = arith.mulf %18, %20 : vector<24x128xf32>
    %cst_17 = arith.constant dense<0.000000e+00> : vector<128xf32>
    %22 = vector.multi_reduction <add>, %21, %cst_17 [0] : vector<24x128xf32> to vector<128xf32>
    %23 = vector.shape_cast %22 : vector<128xf32> to vector<1x128xf32>
    %c0_18 = arith.constant 0 : index
    %c0_19 = arith.constant 0 : index
    %24 = vector.load %arg9[%c0_18, %c0_19] : memref<1x1xf32, #tpu.memory_space<vmem>>, vector<1x1xf32>
    %25 = vector.broadcast %24 : vector<1x1xf32> to vector<1x128xf32>
    %26 = arith.addf %23, %25 : vector<1x128xf32>
    %27 = arith.negf %26 : vector<1x128xf32>
    %28 = math.exp %27 : vector<1x128xf32>
    %cst_20 = arith.constant 1.000000e+00 : f32
    %29 = vector.broadcast %cst_20 : f32 to vector<1x128xf32>
    %30 = arith.addf %29, %28 : vector<1x128xf32>
    %31 = arith.divf %29, %30 : vector<1x128xf32>
    %c0_21 = arith.constant 0 : index
    %c0_22 = arith.constant 0 : index
    %32 = vector.load %arg10[%c0_21, %c0_22] : memref<96x64xf32, #tpu.memory_space<vmem>>, vector<96x64xf32>
    %cst_23 = arith.constant dense<0.000000e+00> : vector<96x128xf32>
    %33 = tpu.matmul %32, %0, %cst_23 {dimension_numbers = #tpu.dot_dimension_numbers<[1], [0], [0], [1], [0, 0, 1, 1], [], []>} : vector<96x64xf32>, vector<64x128xf32>, vector<96x128xf32> -> vector<96x128xf32>
    %c0_24 = arith.constant 0 : index
    %c0_25 = arith.constant 0 : index
    %34 = vector.load %arg11[%c0_24, %c0_25] : memref<96x1xf32, #tpu.memory_space<vmem>>, vector<96x1xf32>
    %35 = vector.broadcast %34 : vector<96x1xf32> to vector<96x128xf32>
    %36 = arith.addf %33, %35 : vector<96x128xf32>
    %cst_26 = arith.constant 0.000000e+00 : f32
    %37 = vector.broadcast %cst_26 : f32 to vector<96x128xf32>
    %38 = arith.maximumf %36, %37 : vector<96x128xf32>
    %39 = vector.broadcast %31 : vector<1x128xf32> to vector<96x128xf32>
    %40 = arith.mulf %38, %39 : vector<96x128xf32>
    %c0_27 = arith.constant 0 : index
    %c0_28 = arith.constant 0 : index
    %41 = vector.load %arg12[%c0_27, %c0_28] : memref<96x128xf32, #tpu.memory_space<vmem>>, vector<96x128xf32>
    tpu.vector_store %arg12[%c0_27, %c0_28], %40 {strides = array<i32>} : memref<96x128xf32, #tpu.memory_space<vmem>>, vector<96x128xf32>,
    %c0_29 = arith.constant 0 : index
    %c0_30 = arith.constant 0 : index
    %42 = vector.load %arg13[%c0_29, %c0_30] : memref<1x128xf32, #tpu.memory_space<vmem>>, vector<1x128xf32>
    tpu.vector_store %arg13[%c0_29, %c0_30], %31 {strides = array<i32>} : memref<1x128xf32, #tpu.memory_space<vmem>>, vector<1x128xf32>,
    return
  }
  func.func @transform_0(%arg0: i32) -> (i32, i32) {
    %c0_i32 = arith.constant 0 : i32
    %c0_i32_0 = arith.constant 0 : i32
    return %c0_i32, %arg0 : i32, i32
  }
  func.func @transform_1(%arg0: i32) -> (i32, i32) {
    %c0_i32 = arith.constant 0 : i32
    %c0_i32_0 = arith.constant 0 : i32
    return %c0_i32, %arg0 : i32, i32
  }
  func.func @transform_2(%arg0: i32) -> (i32, i32) {
    %c0_i32 = arith.constant 0 : i32
    %c0_i32_0 = arith.constant 0 : i32
    %c0_i32_1 = arith.constant 0 : i32
    return %c0_i32, %c0_i32_0 : i32, i32
  }
  func.func @transform_3(%arg0: i32) -> (i32, i32) {
    %c0_i32 = arith.constant 0 : i32
    %c0_i32_0 = arith.constant 0 : i32
    %c0_i32_1 = arith.constant 0 : i32
    return %c0_i32, %c0_i32_0 : i32, i32
  }
  func.func @transform_4(%arg0: i32) -> (i32, i32) {
    %c0_i32 = arith.constant 0 : i32
    %c0_i32_0 = arith.constant 0 : i32
    %c0_i32_1 = arith.constant 0 : i32
    return %c0_i32, %c0_i32_0 : i32, i32
  }
  func.func @transform_5(%arg0: i32) -> (i32, i32) {
    %c0_i32 = arith.constant 0 : i32
    %c0_i32_0 = arith.constant 0 : i32
    %c0_i32_1 = arith.constant 0 : i32
    return %c0_i32, %c0_i32_0 : i32, i32
  }
  func.func @transform_6(%arg0: i32) -> (i32, i32) {
    %c0_i32 = arith.constant 0 : i32
    %c0_i32_0 = arith.constant 0 : i32
    %c0_i32_1 = arith.constant 0 : i32
    return %c0_i32, %c0_i32_0 : i32, i32
  }
  func.func @transform_7(%arg0: i32) -> (i32, i32) {
    %c0_i32 = arith.constant 0 : i32
    %c0_i32_0 = arith.constant 0 : i32
    %c0_i32_1 = arith.constant 0 : i32
    return %c0_i32, %c0_i32_0 : i32, i32
  }
  func.func @transform_8(%arg0: i32) -> (i32, i32) {
    %c0_i32 = arith.constant 0 : i32
    %c0_i32_0 = arith.constant 0 : i32
    %c0_i32_1 = arith.constant 0 : i32
    return %c0_i32, %c0_i32_0 : i32, i32
  }
  func.func @transform_9(%arg0: i32) -> (i32, i32) {
    %c0_i32 = arith.constant 0 : i32
    %c0_i32_0 = arith.constant 0 : i32
    %c0_i32_1 = arith.constant 0 : i32
    return %c0_i32, %c0_i32_0 : i32, i32
  }
  func.func @transform_10(%arg0: i32) -> (i32, i32) {
    %c0_i32 = arith.constant 0 : i32
    %c0_i32_0 = arith.constant 0 : i32
    %c0_i32_1 = arith.constant 0 : i32
    return %c0_i32, %c0_i32_0 : i32, i32
  }
  func.func @transform_11(%arg0: i32) -> (i32, i32) {
    %c0_i32 = arith.constant 0 : i32
    %c0_i32_0 = arith.constant 0 : i32
    return %c0_i32, %arg0 : i32, i32
  }
  func.func @transform_12(%arg0: i32) -> (i32, i32) {
    %c0_i32 = arith.constant 0 : i32
    %c0_i32_0 = arith.constant 0 : i32
    return %c0_i32, %arg0 : i32, i32
  }
}

</mosaic_0001>

<bundles_post_ra>
// kernel: tpu_custom_call.1
= control target key start
LH: loop header
LB: loop body
LE: loop exit
PB: predicated region body
PF: predicated region fallthrough
CT: control target
= control target key end

     0   :  { %s2296_s0 = inlined_call_operand.vmem [shape: f32[64,256], index: 0, kind: input, shape index: {}]   ;;  %s2297_s1 = inlined_call_operand.vmem [shape: f32[96,256], index: 1, kind: input, shape index: {}]   ;;  %s2298_s2 = inlined_call_operand.vmem [shape: f32[64,1], index: 2, kind: input, shape index: {}]   ;;  %s2299_s3 = inlined_call_operand.vmem [shape: f32[64,1], index: 3, kind: input, shape index: {}]   ;;  %s2300_s4 = inlined_call_operand.vmem [shape: f32[24,64], index: 4, kind: input, shape index: {}]   ;;  %s2301_s5 = inlined_call_operand.vmem [shape: f32[24,96], index: 5, kind: input, shape index: {}]   ;;  %s2302_s6 = inlined_call_operand.vmem [shape: f32[24,1], index: 6, kind: input, shape index: {}]   ;;  %s2303_s7 = inlined_call_operand.vmem [shape: f32[24,1], index: 7, kind: input, shape index: {}]   ;;  %s2304_s8 = inlined_call_operand.<no memory space> [shape: f32[1,1], index: 8, kind: input, shape index: {}]   ;;  %s2305_s9 = inlined_call_operand.vmem [shape: f32[96,64], index: 9, kind: input, shape index: {}]   ;;  %s2306_s10 = inlined_call_operand.vmem [shape: f32[96,1], index: 10, kind: input, shape index: {}]   ;;  %s2307_s11 = inlined_call_operand.hbm [shape: f32[96,256], index: 11, kind: output, shape index: {0}]   ;;  %s2308_s12 = inlined_call_operand.hbm [shape: f32[1,256], index: 12, kind: output, shape index: {1}]  }
   0x1   :  { %2310 = sst [smem:[#allocation11_spill]] %s2296_s0  ;;  %v18_v0 = vstv %s2304_s8 }
   0x2   :  { %2311 = sst [smem:[#allocation12_spill]] %s2297_s1  ;;  %19 = vst [vmem:[#allocation2] sm:$0x1] %v18_v0 }
   0x3   :  { %2312 = sst [smem:[#allocation13_spill]] %s2298_s2 }
   0x4   :  { %2313 = sst [smem:[#allocation14_spill]] %s2299_s3 }
   0x5   :  { %2314 = sst [smem:[#allocation15_spill]] %s2300_s4 }
   0x6   :  { %20 = vsyncpa [#allocation6], 0 }
   0x7   :  { %22 = vsyncpa [#allocation6 + $0x1], 0 }
   0x8   :  { %23 = vsyncpa [#allocation8], 0 }
   0x9   :  { %25 = vsyncpa [#allocation8 + $0x1], 0  ;;  %s1825_s23 = smov 0   ;;  %s1827_s24 = smov 0  }
   0xa   :  { %s1829_s25 = smov 0   ;;  %s1831_s26 = smov 0  }
   0xb LB: > { %s1846_s8 = sadd.s32 4294967295, %s1747_s26   ;;  %s1408_s27 = sadd.s32 4294967294, %s1747_s26   ;;  %s1747_s26 = sphi %s1831_s26, %s2327_s26   ;;  %s1743_s25 = sphi %s1829_s25, %s2326_s25   ;;  %s1739_s24 = sphi %s1827_s24, %s2325_s24   ;;  %s1735_s23 = sphi %s1825_s23, %s2324_s23  }
   0xc   : > { %s1850_s28 = sadd.s32 1, %s1747_s26   ;;  %s38_s29 = sadd.s32 1, %s1743_s25 }
   0xd   : > { %s35_s30 = ssub.s32 %s1747_s26, %s1850_s28  ;;  %p45_p0 = scmp.ne.s32.totalorder %s1743_s25, %s1739_s24 }
   0xe   : > { %p36_p1 = scmp.eq.s32.totalorder %s35_s30, 0  ;;  %p46_p2 = scmp.eq.s32.totalorder %s1747_s26, 0 }
   0xf   : > { %p290_p3 = scmp.eq.s32.totalorder %s1846_s8, 1  ;;  %p295_p4 = scmp.ne.s32.totalorder %s1739_s24, %s1735_s23 }
  0x10   : > { %s1862_s13 = scalar_select %p36_p1, %s1743_s25, %s38_s29  }
  0x11   : > { %p1864_p5 = por %p46_p2, %p45_p0  ;;  %p1868_p6 = por %p290_p3, %p45_p0 }
  0x12   : > { %p296_p7 = scmp.eq.s32.totalorder %s1408_s27, 1  ;;  %p1410_p9 = scmp.ge.s32.totalorder %s1747_s26, 2 }
  0x14   : > { %p1872_p8 = por %p296_p7, %p295_p4  ;;  %365 = sbr.rel (%p1410_p9) target bundleno = 55 (0x37), region = 52 }
  0x19   : > { %368 = sbr.rel (!%p1864_p5) target bundleno = 39 (0x27), region = 56  ;;  %s370_s17 = sand.u32 (%p1864_p5), 1, %s1743_s25  }
  0x1a   : > { %s1412_s18 = sshll.u32 (%p1864_p5), %s1747_s26, 3  ;;  %s1411_s19 = sshll.u32 (%p1864_p5), %s370_s17, 6 }
  0x1b   : > { %s2318_s0 = sld [smem:[#allocation11_spill]] (%p1864_p5)  ;;  %s372_s27 = scalar_lea.vmem (%p1864_p5), [#allocation3], %s1411_s19 }
  0x21   : > { %s374_s22 = scalar_lea.vmem %s2318_s0, %s1412_s18 }
  0x22   : > { %v417_v1 = vld [vmem:[%s374_s22] sm:$0xff]  ;;  %v419_v2 = vld [vmem:[%s374_s22 + $0x10] sm:$0xff] }
  0x23   : > { %v421_v3 = vld [vmem:[%s374_s22 + $0x20] sm:$0xff]  ;;  %418 = vst [vmem:[%s372_s27] sm:$0xff] %v417_v1  ;;  %420 = vst [vmem:[%s372_s27 + $0x8] sm:$0xff] %v419_v2  ;;  %v423_v4 = vld [vmem:[%s374_s22 + $0x30] sm:$0xff] }
  0x24   : > { %422 = vst [vmem:[%s372_s27 + $0x10] sm:$0xff] %v421_v3  ;;  %v425_v5 = vld [vmem:[%s374_s22 + $0x40] sm:$0xff]  ;;  %v427_v6 = vld [vmem:[%s374_s22 + $0x50] sm:$0xff]  ;;  %424 = vst [vmem:[%s372_s27 + $0x18] sm:$0xff] %v423_v4 }
  0x25   : > { %426 = vst [vmem:[%s372_s27 + $0x20] sm:$0xff] %v425_v5  ;;  %428 = vst [vmem:[%s372_s27 + $0x28] sm:$0xff] %v427_v6  ;;  %v429_v7 = vld [vmem:[%s374_s22 + $0x60] sm:$0xff]  ;;  %v431_v8 = vld [vmem:[%s374_s22 + $0x70] sm:$0xff] }
  0x26   : > { %430 = vst [vmem:[%s372_s27 + $0x30] sm:$0xff] %v429_v7  ;;  %432 = vst [vmem:[%s372_s27 + $0x38] sm:$0xff] %v431_v8 }
  0x27 PF: > { %438 = sbr.rel (!%p1864_p5) target bundleno = 55 (0x37), region = 94  ;;  %s440_s29 = sand.u32 (%p1864_p5), 1, %s1743_s25  }
  0x28   : > { %s1413_s30 = sshll.u32 (%p1864_p5), %s1747_s26, 3  ;;  %s1593_s17 = smul.u32 (%p1864_p5), 96, %s440_s29 }
  0x29   : > { %s2319_s1 = sld [smem:[#allocation12_spill]] (%p1864_p5) }
  0x2a   : > { %s442_s21 = scalar_lea.vmem (%p1864_p5), [#allocation4], %s1593_s17 }
  0x2f   : > { %s444_s20 = scalar_lea.vmem %s2319_s1, %s1413_s30 }
  0x30   : > { %v495_v9 = vld [vmem:[%s444_s20] sm:$0xff]  ;;  %v497_v10 = vld [vmem:[%s444_s20 + $0x10] sm:$0xff] }
  0x31   : > { %v499_v11 = vld [vmem:[%s444_s20 + $0x20] sm:$0xff]  ;;  %v501_v12 = vld [vmem:[%s444_s20 + $0x30] sm:$0xff]  ;;  %496 = vst [vmem:[%s442_s21] sm:$0xff] %v495_v9  ;;  %498 = vst [vmem:[%s442_s21 + $0x8] sm:$0xff] %v497_v10 }
  0x32   : > { %v503_v13 = vld [vmem:[%s444_s20 + $0x40] sm:$0xff]  ;;  %v505_v14 = vld [vmem:[%s444_s20 + $0x50] sm:$0xff]  ;;  %500 = vst [vmem:[%s442_s21 + $0x10] sm:$0xff] %v499_v11  ;;  %502 = vst [vmem:[%s442_s21 + $0x18] sm:$0xff] %v501_v12 }
  0x33   : > { %504 = vst [vmem:[%s442_s21 + $0x20] sm:$0xff] %v503_v13  ;;  %506 = vst [vmem:[%s442_s21 + $0x28] sm:$0xff] %v505_v14  ;;  %v507_v15 = vld [vmem:[%s444_s20 + $0x60] sm:$0xff]  ;;  %v509_v16 = vld [vmem:[%s444_s20 + $0x70] sm:$0xff] }
  0x34   : > { %v511_v17 = vld [vmem:[%s444_s20 + $0x80] sm:$0xff]  ;;  %508 = vst [vmem:[%s442_s21 + $0x30] sm:$0xff] %v507_v15  ;;  %510 = vst [vmem:[%s442_s21 + $0x38] sm:$0xff] %v509_v16  ;;  %v513_v18 = vld [vmem:[%s444_s20 + $0x90] sm:$0xff] }
  0x35   : > { %512 = vst [vmem:[%s442_s21 + $0x40] sm:$0xff] %v511_v17  ;;  %v515_v19 = vld [vmem:[%s444_s20 + $0xa0] sm:$0xff]  ;;  %v517_v20 = vld [vmem:[%s444_s20 + $0xb0] sm:$0xff]  ;;  %514 = vst [vmem:[%s442_s21 + $0x48] sm:$0xff] %v513_v18 }
  0x36   : > { %516 = vst [vmem:[%s442_s21 + $0x50] sm:$0xff] %v515_v19  ;;  %518 = vst [vmem:[%s442_s21 + $0x58] sm:$0xff] %v517_v20 }
  0x37 PF: > { %p1414_p10 = scmp.ge.s32.totalorder %s1747_s26, 1  ;;  %p523_p11 = scmp.lt.s32.totalorder %s1747_s26, 3 }
  0x39   : > { %p524_p12 = pnand %p1414_p10, %p523_p11 }
  0x3a   : > { %s2320_s3 = sld [smem:[#allocation14_spill]] (!%p524_p12)  ;;  %s1902_s30 = sand.u32 (!%p524_p12), 1, %s1739_s24  }
  0x3b   : > { %527 = sbr.rel (%p524_p12) target bundleno = 532 (0x214), region = 132  ;;  %s2321_s2 = sld [smem:[#allocation13_spill]] (!%p524_p12) }
  0x3c   : > { %s2309_s17 = smul.u32 (!%p524_p12), 96, %s1902_s30  ;;  %s1415_s29 = sshll.u32 (!%p524_p12), %s1902_s30, 6 }
  0x3d   : > { %s1974_s22 = scalar_lea.vmem (!%p524_p12), [#allocation3], %s1415_s29  ;;  %s2322_s4 = sld [smem:[#allocation15_spill]] (!%p524_p12) }
  0x3e   : > { %s1916_s14 = scalar_lea.vmem (!%p524_p12), [#allocation4], %s2309_s17  ;;  %s585_s27 = scalar_lea.vmem (!%p524_p12), [#allocation7], %s1902_s30 }
  0x3f   : > { %s1297_s17 = sshll.u32 (!%p524_p12), %s585_s27, 4  ;;  %s1435_s18 = sshll.u32 (!%p524_p12), %s1846_s8, 7  ;;  %s2213_s17 = int_to_ptr.vmem [resolvable:$true] %s1297_s17 }
  0x40   : > { %v669_v21 = vld [vmem:[%s2320_s3 + $0x38] sm:$0xff]  ;;  %v1749_v23 = vmov 0   ;;  %v1750_v24 = vmov 0.0   ;;  %vm1751_vm0 = vmmov 0   ;;  %v603_v29 = vld [vmem:[%s1916_s14 + $0x48] sm:$0xff]  ;;  %v602_v32 = vld [vmem:[%s1916_s14 + $0x40] sm:$0xff]  ;;  %s2218_s1 = scalar_lea.hbm %s2307_s11, %s1435_s18 }
  0x41   : > { %v613_v22 = vld [vmem:[%s2321_s2 + $0x38] sm:$0xff]  ;;  %1646 = vset.pattern.permute.xlu1 %v1749_v23  ;;  %1645 = vset.pattern.permute.xlu0 %v1749_v23  ;;  %v612_v25 = vld [vmem:[%s2321_s2 + $0x30] sm:$0xff]  ;;  %v611_v26 = vld [vmem:[%s2321_s2 + $0x28] sm:$0xff]  ;;  %vm732_vm1 = vcmask 785408   ;;  %vm822_vm2 = vcmask 523264   ;;  %s2323_s19 = smul.u32 96, %s1902_s30 }
  0x42   : > { %707 = vperm.xlu1 %1646, %v669_v21   ;;  %651 = vperm.xlu0 %1645, %v613_v22   ;;  %v605_v27 = vld [vmem:[%s1916_s14 + $0x58] sm:$0xff]  ;;  %v604_v28 = vld [vmem:[%s1916_s14 + $0x50] sm:$0xff]  ;;  %v667_v34 = vld [vmem:[%s2320_s3 + $0x28] sm:$0xff]  ;;  %s1657_s29 = scalar_lea.vmem %s2213_s17, 16  ;;  %s1752_s18 = smov [#allocation7]  }
  0x43   : > { %1485 = vmatprep.subr.mxu0 %v1750_v24  ;;  %1509 = vmatprep.mubr.msk.f32.mxu0 %vm1751_vm0, %v1750_v24  ;;  %v668_v30 = vld [vmem:[%s2320_s3 + $0x30] sm:$0xff]  ;;  %v610_v31 = vld [vmem:[%s2321_s2 + $0x20] sm:$0xff]  ;;  %v609_v35 = vld [vmem:[%s2321_s2 + $0x18] sm:$0xff]  ;;  %s2205_s20 = scalar_lea.vmem [#allocation5], %s2323_s19  ;;  %p1658_p13 = scmp.ne.s32.totalorder %s2213_s17, %s1657_s29 }
  0x44   : > { %1518 = vmatprep.subr.mxu1 %v1750_v24  ;;  %1534 = vmatprep.mubr.msk.f32.mxu1 %vm1751_vm0, %v1750_v24  ;;  %v601_v33 = vld [vmem:[%s1916_s14 + $0x38] sm:$0xff]  ;;  %v600_v36 = vld [vmem:[%s1916_s14 + $0x30] sm:$0xff]  ;;  %v599_v37 = vld [vmem:[%s1916_s14 + $0x28] sm:$0xff]  ;;  %s1661_s0 = sshll.u32 %s1752_s18, 4  ;;  %s1662_s0 = int_to_ptr.vmem [resolvable:$false] %s1661_s0 }
  0x45   : > { %1486 = vmatpush3.msra.mxu0 %v605_v27  ;;  %v666_v38 = vld [vmem:[%s2320_s3 + $0x20] sm:$0xff]  ;;  %v608_v39 = vld [vmem:[%s2321_s2 + $0x10] sm:$0xff]  ;;  %v665_v42 = vld [vmem:[%s2320_s3 + $0x18] sm:$0xff]  ;;  %p1659_p0 = pnand %p1658_p13, %p1868_p6  ;;  %s1663_s21 = scalar_lea.vmem %s1662_s0, 32 }
  0x46   : > { %646 = vperm.xlu0 %1645, %v612_v25   ;;  %641 = vperm.xlu1 %1646, %v611_v26   ;;  %v598_v40 = vld [vmem:[%s1916_s14 + $0x20] sm:$0xff]  ;;  %v597_v41 = vld [vmem:[%s1916_s14 + $0x18] sm:$0xff]  ;;  %v596_v44 = vld [vmem:[%s1916_s14 + $0x10] sm:$0xff]  ;;  %p1664_p2 = scmp.lt.s32.totalorder %s2213_s17, %s1662_s0  ;;  %p1665_p3 = scmp.lt.s32.totalorder %s1663_s21, %s1657_s29 }
  0x47   : > { %1487 = vmatprep.subr.mxu0 %v1750_v24  ;;  %v607_v43 = vld [vmem:[%s2321_s2 + $0x8] sm:$0xff]  ;;  %v664_v46 = vld [vmem:[%s2320_s3 + $0x10] sm:$0xff]  ;;  %v606_v47 = vld [vmem:[%s2321_s2] sm:$0xff]  ;;  %p1660_p1 = pneg %p1659_p0 }
  0x48   : > { %1488 = vmatpush3.msra.mxu0 %v604_v28  ;;  %v595_v45 = vld [vmem:[%s1916_s14 + $0x8] sm:$0xff]  ;;  %v594_v48 = vld [vmem:[%s1916_s14] sm:$0xff]  ;;  %v1977_v49 = vld [vmem:[%s1974_s22 + $0x38] sm:$0xff]  ;;  %s1281_s14 = sshll.u32 %s2205_s20, 4  ;;  %p1666_p4 = por %p1665_p3, %p1664_p2  ;;  %s2220_s14 = int_to_ptr.vmem [resolvable:$true] %s1281_s14 }
  0x49   : > { %1489 = vmatprep.subr.mxu0 %v1750_v24  ;;  %v729_v50 = vld [vmem:[%s2301_s5] sm:$0xff]  ;;  %v663_v51 = vld [vmem:[%s2320_s3 + $0x8] sm:$0xff]  ;;  %v1990_v53 = vld [vmem:[%s1974_s22 + $0x30] sm:$0xff] }
  0x4a   : > { %1490 = vmatpush3.msra.mxu0 %v603_v29  ;;  %702 = vperm.xlu0 %1645, %v668_v30   ;;  %v662_v52 = vld [vmem:[%s2320_s3] sm:$0xff]  ;;  %v1996_v54 = vld [vmem:[%s1974_s22 + $0x28] sm:$0xff]  ;;  %v2032_v63 = vld [vmem:[%s1974_s22 + $0x10] sm:$0xff]  ;;  %p1667_p5 = pnand %p1666_p4, %p1660_p1 }
  0x4b   : > { %636 = vperm.xlu1 %1646, %v610_v31   ;;  %1491 = vmatprep.subr.mxu0 %v1750_v24  ;;  %v730_v55 = vld [vmem:[%s2301_s5 + $0x8] sm:$0xff]  ;;  %v912_v56 = vld [vmem:[%s2302_s6] sm:$0xff]  ;;  %v731_v60 = vld [vmem:[%s2301_s5 + $0x10] sm:$0xff] }
  0x4c   : > { %1492 = vmatpush3.msra.mxu0 %v602_v32  ;;  %v913_v57 = vld [vmem:[%s2302_s6 + $0x8] sm:$0xff]  ;;  %v2018_v59 = vld [vmem:[%s1974_s22 + $0x18] sm:$0xff]  ;;  %v914_v61 = vld [vmem:[%s2302_s6 + $0x10] sm:$0xff] }
  0x4d   : > { %1493 = vmatprep.subr.mxu0 %v1750_v24  ;;  %v2010_v58 = vld [vmem:[%s1974_s22 + $0x20] sm:$0xff]  ;;  %v2043_v1 = vld [vmem:[%s1974_s22 + $0x8] sm:$0xff]  ;;  %v965_v6 = vld [vmem:[#allocation2] sm:$0x1] }
  0x4e   : > { %1494 = vmatpush3.msra.mxu0 %v601_v33  ;;  %697 = vperm.xlu0 %1645, %v667_v34   ;;  %v936_v62 = vld [vmem:[%s2303_s7] sm:$0xff]  ;;  %v937_v2 = vld [vmem:[%s2303_s7 + $0x8] sm:$0xff]  ;;  %v938_v3 = vld [vmem:[%s2303_s7 + $0x10] sm:$0xff] }
  0x4f   : > { %631 = vperm.xlu1 %1646, %v609_v35   ;;  %1495 = vmatprep.subr.mxu0 %v1750_v24  ;;  %v982_v0 = vld [vmem:[%s2305_s9] sm:$0xff]  ;;  %v983_v5 = vld [vmem:[%s2305_s9 + $0x8] sm:$0xff]  ;;  %v984_v7 = vld [vmem:[%s2305_s9 + $0x10] sm:$0xff] }
  0x50   : > { %1496 = vmatpush3.msra.mxu0 %v600_v36  ;;  %v2054_v4 = vld [vmem:[%s1974_s22] sm:$0xff]  ;;  %v985_v9 = vld [vmem:[%s2305_s9 + $0x18] sm:$0xff]  ;;  %v996_v11 = vld [vmem:[%s2306_s10 + $0x10] sm:$0xff]  ;;  %s1436_s22 = sshll.u32 %s1846_s8, 4 }
  0x51   : > { %1497 = vmatprep.subr.mxu0 %v1750_v24  ;;  %v994_v8 = vld [vmem:[%s2306_s10] sm:$0xff]  ;;  %v995_v10 = vld [vmem:[%s2306_s10 + $0x8] sm:$0xff]  ;;  %v997_v12 = vld [vmem:[%s2306_s10 + $0x18] sm:$0xff]  ;;  %s2211_s8 = scalar_lea.hbm %s2308_s12, %s1436_s22  ;;  %s1270_s22 = scalar_lea.sflag [#allocation8], %s1902_s30 }
  0x52   : > { %1498 = vmatpush3.msra.mxu0 %v599_v37  ;;  %692 = vperm.xlu0 %1645, %v666_v38   ;;  %v998_v13 = vld [vmem:[%s2306_s10 + $0x20] sm:$0xff]  ;;  %v999_v14 = vld [vmem:[%s2306_s10 + $0x28] sm:$0xff]  ;;  %v1000_v15 = vld [vmem:[%s2306_s10 + $0x30] sm:$0xff] }
  0x53   : > { %626 = vperm.xlu1 %1646, %v608_v39   ;;  %1499 = vmatprep.subr.mxu0 %v1750_v24  ;;  %v1001_v16 = vld [vmem:[%s2306_s10 + $0x38] sm:$0xff]  ;;  %v1002_v17 = vld [vmem:[%s2306_s10 + $0x40] sm:$0xff]  ;;  %v1003_v18 = vld [vmem:[%s2306_s10 + $0x48] sm:$0xff] }
  0x54   : > { %1500 = vmatpush3.msra.mxu0 %v598_v40  ;;  %v1004_v19 = vld [vmem:[%s2306_s10 + $0x50] sm:$0xff]  ;;  %v1005_v20 = vld [vmem:[%s2306_s10 + $0x58] sm:$0xff] }
  0x55   : > { %1501 = vmatprep.subr.mxu0 %v1750_v24 }
  0x56   : > { %1502 = vmatpush3.msra.mxu0 %v597_v41  ;;  %687 = vperm.xlu0 %1645, %v665_v42  }
  0x57   : > { %621 = vperm.xlu1 %1646, %v607_v43   ;;  %1503 = vmatprep.subr.mxu0 %v1750_v24 }
  0x58   : > { %1504 = vmatpush3.msra.mxu0 %v596_v44 }
  0x59   : > { %1505 = vmatprep.subr.mxu0 %v1750_v24 }
  0x5a   : > { %1506 = vmatpush3.msra.mxu0 %v595_v45  ;;  %682 = vperm.xlu0 %1645, %v664_v46  }
  0x5b   : > { %616 = vperm.xlu1 %1646, %v606_v47   ;;  %1507 = vmatprep.subr.mxu0 %v1750_v24 }
  0x5c   : > { %1508 = vmatpush3.msra.mxu0 %v594_v48 }
  0x5d   : > { %1543 = vmatprep.subr.mxu0 %v1977_v49  ;;  %1510 = vmatmul.mubr.msk.f32.vlgmr.msra.gmra.mxu0 %vm732_vm1, %v729_v50 }
  0x5e   : > { %1544 = vmatpush3.msra.mxu0 %v1977_v49  ;;  %677 = vperm.xlu0 %1645, %v663_v51  }
  0x5f   : > { %672 = vperm.xlu1 %1646, %v662_v52   ;;  %1545 = vmatprep.subr.mxu0 %v1990_v53 }
  0x60   : > { %1546 = vmatpush3.msra.mxu0 %v1990_v53  ;;  %1512 = vmatprep.mubr.msk.f32.mxu0 %vm1751_vm0, %v1750_v24 }
  0x61   : > { %1547 = vmatprep.subr.mxu0 %v1996_v54  ;;  %1513 = vmatmul.mubr.msk.f32.gmra.mxu0 %vm732_vm1, %v730_v55 }
  0x62   : > { %1548 = vmatpush3.msra.mxu0 %v1996_v54  ;;  %917 = vperm.xlu0 %1645, %v912_v56  }
  0x63   : > { %922 = vperm.xlu1 %1646, %v913_v57   ;;  %1549 = vmatprep.subr.mxu0 %v2010_v58 }
  0x64   : > { %1550 = vmatpush3.msra.mxu0 %v2010_v58  ;;  %1515 = vmatprep.mubr.msk.f32.mxu0 %vm1751_vm0, %v1750_v24 }
  0x65   : > { %1551 = vmatprep.subr.mxu0 %v2018_v59  ;;  %1516 = vmatmul.mubr.msk.f32.gmra.mxu0 %vm732_vm1, %v731_v60 }
  0x66   : > { %1552 = vmatpush3.msra.mxu0 %v2018_v59  ;;  %927 = vperm.xlu0 %1645, %v914_v61  }
  0x67   : > { %941 = vperm.xlu1 %1646, %v936_v62   ;;  %1553 = vmatprep.subr.mxu0 %v2032_v63 }
  0x68   : > { %1554 = vmatpush3.msra.mxu0 %v2032_v63  ;;  %1559 = vmatprep.mubr.msk.f32.mxu0 %vm822_vm2, %v982_v0 }
  0x69   : > { %1555 = vmatprep.subr.mxu0 %v2043_v1 }
  0x6a   : > { %1556 = vmatpush3.msra.mxu0 %v2043_v1  ;;  %946 = vperm.xlu0 %1645, %v937_v2  }
  0x6b   : > { %951 = vperm.xlu1 %1646, %v938_v3   ;;  %1557 = vmatprep.subr.mxu0 %v2054_v4 }
  0x6c   : > { %1558 = vmatpush3.msra.mxu0 %v2054_v4 }
  0x6d   : > { %1560 = vmatmul.mubr.msk.f32.vlgmr.msra.gmra.mxu0 %vm822_vm2, %v983_v5 }
  0x6e   : > { %968 = vperm.xlu0 %1645, %v965_v6   ;;  %1562 = vmatprep.mubr.msk.f32.mxu0 %vm822_vm2, %v984_v7  ;;  %v726_v6 = vld [vmem:[%s2322_s4] sm:$0xff]  ;;  %v727_v7 = vld [vmem:[%s2322_s4 + $0x8] sm:$0xff] }
  0x6f   : > { %1008 = vperm.xlu1 %1646, %v994_v8   ;;  %v986_v8 = vld [vmem:[%s2305_s9 + $0x20] sm:$0xff] }
  0x71   : > { %1563 = vmatmul.mubr.msk.f32.gmra.mxu0 %vm822_vm2, %v985_v9 }
  0x72   : > { %1013 = vperm.xlu0 %1645, %v995_v10  }
  0x73   : > { %1018 = vperm.xlu1 %1646, %v996_v11  }
  0x76   : > { %1023 = vperm.xlu0 %1645, %v997_v12  }
  0x77   : > { %1028 = vperm.xlu1 %1646, %v998_v13  }
  0x7a   : > { %1033 = vperm.xlu0 %1645, %v999_v14  }
  0x7b   : > { %1038 = vperm.xlu1 %1646, %v1000_v15  }
  0x7e   : > { %1043 = vperm.xlu0 %1645, %v1001_v16  }
  0x7f   : > { %1048 = vperm.xlu1 %1646, %v1002_v17  }
  0x82   : > { %1053 = vperm.xlu0 %1645, %v1003_v18  }
  0x83   : > { %1058 = vperm.xlu1 %1646, %v1004_v19  }
  0x86   : > { %1063 = vperm.xlu0 %1645, %v1005_v20  }
  0xbd   : > { %v708_v21 = vpop.permute.xlu1 %707  ;;  %v652_v22 = vpop.permute.xlu0 %651 }
  0xbe   : > { %v661_v23 = vmul.f32 %v652_v22, %v1977_v49 }
  0xc0   : > { %v717_v25 = vadd.f32 %v708_v21, %v661_v23 }
  0xc1   : > { %v647_v26 = vpop.permute.xlu0 %646  ;;  %v642_v27 = vpop.permute.xlu1 %641 }
  0xc2   : > { %v725_v28 = vmax.f32 %v717_v25, 0.0  ;;  %v660_v29 = vmul.f32 %v647_v26, %v1990_v53  ;;  %v659_v33 = vmul.f32 %v642_v27, %v1996_v54 }
  0xc4   : > { %1519 = vmatpush3.msra.mxu1 %v725_v28 }
  0xc5   : > { %v703_v30 = vpop.permute.xlu0 %702  ;;  %1520 = vmatprep.subr.mxu1 %v1750_v24 }
  0xc6   : > { %v716_v31 = vadd.f32 %v703_v30, %v660_v29  ;;  %v637_v32 = vpop.permute.xlu1 %636 }
  0xc7   : > { %v658_v38 = vmul.f32 %v637_v32, %v2010_v58 }
  0xc8   : > { %v724_v34 = vmax.f32 %v716_v31, 0.0 }
  0xc9   : > { %v698_v35 = vpop.permute.xlu0 %697 }
  0xca   : > { %v715_v36 = vadd.f32 %v698_v35, %v659_v33  ;;  %v632_v37 = vpop.permute.xlu1 %631  ;;  %1521 = vmatpush3.msra.mxu1 %v724_v34 }
  0xcb   : > { %1522 = vmatprep.subr.mxu1 %v1750_v24  ;;  %v657_v43 = vmul.f32 %v632_v37, %v2018_v59 }
  0xcc   : > { %v723_v39 = vmax.f32 %v715_v36, 0.0 }
  0xcd   : > { %v693_v40 = vpop.permute.xlu0 %692 }
  0xce   : > { %v714_v41 = vadd.f32 %v693_v40, %v658_v38  ;;  %v627_v42 = vpop.permute.xlu1 %626  ;;  %1523 = vmatpush3.msra.mxu1 %v723_v39  ;;  %v971_v40 = vlaneseq }
  0xcf   : > { %1524 = vmatprep.subr.mxu1 %v1750_v24  ;;  %v656_v48 = vmul.f32 %v627_v42, %v2032_v63 }
  0xd0   : > { %v722_v44 = vmax.f32 %v714_v41, 0.0 }
  0xd1   : > { %v688_v45 = vpop.permute.xlu0 %687 }
  0xd2   : > { %v713_v46 = vadd.f32 %v688_v45, %v657_v43  ;;  %v622_v47 = vpop.permute.xlu1 %621  ;;  %1525 = vmatpush3.msra.mxu1 %v722_v44  ;;  %v972_v43 = vshrl.u32 %v971_v40, 7 }
  0xd3   : > { %1526 = vmatprep.subr.mxu1 %v1750_v24  ;;  %v655_v56 = vmul.f32 %v622_v47, %v2043_v1 }
  0xd4   : > { %v721_v50 = vmax.f32 %v713_v46, 0.0  ;;  %v973_v47 = vsub.s32 0, %v972_v43 }
  0xd5   : > { %v683_v51 = vpop.permute.xlu0 %682 }
  0xd6   : > { %v712_v52 = vadd.f32 %v683_v51, %v656_v48  ;;  %v617_v55 = vpop.permute.xlu1 %616  ;;  %1527 = vmatpush3.msra.mxu1 %v721_v50 }
  0xd7   : > { %1528 = vmatprep.subr.mxu1 %v1750_v24  ;;  %v654_v60 = vmul.f32 %v617_v55, %v2054_v4 }
  0xd8   : > { %v720_v57 = vmax.f32 %v712_v52, 0.0 }
  0xd9   : > { %v678_v61 = vpop.permute.xlu0 %677 }
  0xda   : > { %v711_v62 = vadd.f32 %v678_v61, %v655_v56  ;;  %v673_v0 = vpop.permute.xlu1 %672  ;;  %1529 = vmatpush3.msra.mxu1 %v720_v57 }
  0xdb   : > { %v710_v2 = vadd.f32 %v673_v0, %v654_v60  ;;  %1530 = vmatprep.subr.mxu1 %v1750_v24 }
  0xdc   : > { %v719_v3 = vmax.f32 %v711_v62, 0.0 }
  0xdd   : > { %v718_v5 = vmax.f32 %v710_v2, 0.0  ;;  %v918_v17 = vpop.permute.xlu0 %917 }
  0xde   : > { %1531 = vmatpush3.msra.mxu1 %v719_v3  ;;  %v923_v21 = vpop.permute.xlu1 %922 }
  0xdf   : > { %1532 = vmatprep.subr.mxu1 %v1750_v24 }
  0xe0   : > { %1533 = vmatpush3.msra.mxu1 %v718_v5 }
  0xe1   : > { %1535 = vmatmul.mubr.msk.f32.vlgmr.msra.gmra.mxu1 %vm822_vm2, %v726_v6  ;;  %1577 = vmatprep.subr.mxu1 %v1977_v49  ;;  %v928_v27 = vpop.permute.xlu0 %927 }
  0xe2   : > { %1585 = vmatpush3.msra.mxu1 %v1977_v49  ;;  %1537 = vmatprep.mubr.msk.f32.mxu1 %vm1751_vm0, %v1750_v24  ;;  %v728_v49 = vld [vmem:[%s2322_s4 + $0x10] sm:$0xff]  ;;  %v942_v30 = vpop.permute.xlu1 %941 }
  0xe3   : > { %1578 = vmatprep.subr.mxu1 %v1990_v53 }
  0xe4   : > { %1586 = vmatpush3.msra.mxu1 %v1990_v53  ;;  %v988_v53 = vld [vmem:[%s2305_s9 + $0x30] sm:$0xff] }
  0xe5   : > { %1538 = vmatmul.mubr.msk.f32.gmra.mxu1 %vm822_vm2, %v727_v7  ;;  %1579 = vmatprep.subr.mxu1 %v1996_v54  ;;  %v947_v33 = vpop.permute.xlu0 %946 }
  0xe6   : > { %1587 = vmatpush3.msra.mxu1 %v1996_v54  ;;  %1540 = vmatprep.mubr.msk.f32.mxu1 %vm1751_vm0, %v1750_v24  ;;  %v987_v24 = vld [vmem:[%s2305_s9 + $0x28] sm:$0xff]  ;;  %v989_v54 = vld [vmem:[%s2305_s9 + $0x38] sm:$0xff]  ;;  %v952_v37 = vpop.permute.xlu1 %951 }
  0xe7   : > { %1580 = vmatprep.subr.mxu1 %v2010_v58 }
  0xe8   : > { %1588 = vmatpush3.msra.mxu1 %v2010_v58  ;;  %v990_v58 = vld [vmem:[%s2305_s9 + $0x40] sm:$0xff] }
  0xe9   : > { %1541 = vmatmul.mubr.msk.f32.gmra.mxu1 %vm822_vm2, %v728_v49  ;;  %1581 = vmatprep.subr.mxu1 %v2018_v59  ;;  %v969_v45 = vpop.permute.xlu0 %968 }
  0xea   : > { %1589 = vmatpush3.msra.mxu1 %v2018_v59  ;;  %1565 = vmatprep.mubr.msk.f32.mxu1 %vm822_vm2, %v986_v8  ;;  %v991_v59 = vld [vmem:[%s2305_s9 + $0x48] sm:$0xff]  ;;  %v1009_v51 = vpop.permute.xlu1 %1008  ;;  %v974_v52 = vrot.slane %v969_v45, %v973_v47 }
  0xeb   : > { %1582 = vmatprep.subr.mxu1 %v2032_v63 }
  0xec   : > { %1590 = vmatpush3.msra.mxu1 %v2032_v63  ;;  %v992_v63 = vld [vmem:[%s2305_s9 + $0x50] sm:$0xff] }
  0xed   : > { %1583 = vmatprep.subr.mxu1 %v2043_v1  ;;  %v1014_v55 = vpop.permute.xlu0 %1013 }
  0xee   : > { %1591 = vmatpush3.msra.mxu1 %v2043_v1  ;;  %v993_v1 = vld [vmem:[%s2305_s9 + $0x58] sm:$0xff]  ;;  %v1019_v0 = vpop.permute.xlu1 %1018 }
  0xef   : > { %1584 = vmatprep.subr.mxu1 %v2054_v4 }
  0xf0   : > { %1592 = vmatpush3.msra.mxu1 %v2054_v4 }
  0xf1   : > { %1566 = vmatmul.mubr.msk.f32.vlgmr.msra.gmra.mxu1 %vm822_vm2, %v987_v24  ;;  %v1024_v2 = vpop.permute.xlu0 %1023 }
  0xf2   : > { %1568 = vmatprep.mubr.msk.f32.mxu1 %vm822_vm2, %v988_v53  ;;  %v1029_v5 = vpop.permute.xlu1 %1028 }
  0xf5   : > { %1569 = vmatmul.mubr.msk.f32.gmra.mxu1 %vm822_vm2, %v989_v54  ;;  %v1034_v6 = vpop.permute.xlu0 %1033 }
  0xf6   : > { %1571 = vmatprep.mubr.msk.f32.mxu1 %vm822_vm2, %v990_v58  ;;  %v1039_v24 = vpop.permute.xlu1 %1038 }
  0xf9   : > { %1572 = vmatmul.mubr.msk.f32.gmra.mxu1 %vm822_vm2, %v991_v59  ;;  %v1044_v53 = vpop.permute.xlu0 %1043 }
  0xfa   : > { %1574 = vmatprep.mubr.msk.f32.mxu1 %vm822_vm2, %v992_v63 }
  0xfd   : > { %1575 = vmatmul.mubr.msk.f32.gmra.mxu1 %vm822_vm2, %v993_v1 }
 0x11d   : > { %v808_v4 = vpop.f32.mrf.mxu0 }
 0x11f   : > { %v1511_v9 = vpop.f32.mrf.mxu0 }
 0x120   : > { %v1054_v9 = vpop.permute.xlu0 %1053 }
 0x121   : > { %v813_v10 = vpop.f32.mrf.mxu0 }
 0x123   : > { %v1514_v11 = vpop.f32.mrf.mxu0 }
 0x125   : > { %v818_v12 = vpop.f32.mrf.mxu0 }
 0x127   : > { %v1517_v13 = vpop.f32.mrf.mxu0 }
 0x12d   : > { %v1561_v49 = vpop.f32.mrf.mxu0 }
 0x12e   : > { %v2188_v13 = vadd.f32 %v1561_v49, %v1014_v55 }
 0x12f   : > { %v1168_v54 = vpop.f32.mrf.mxu0 }
 0x131   : > { %v1564_v1 = vpop.f32.mrf.mxu0 }
 0x133   : > { %v1178_v11 = vpop.f32.mrf.mxu0 }
 0x1a1   : > { %v898_v14 = vpop.f32.mrf.mxu1 }
 0x1a2   : > { %v899_v15 = vadd.f32 %v898_v14, %v808_v4  ;;  %v1049_v4 = vpop.permute.xlu1 %1048  ;;  %v2190_v14 = vadd.f32 %v1168_v54, %v1009_v51 }
 0x1a3   : > { %v1536_v16 = vpop.f32.mrf.mxu1 }
 0x1a4   : > { %v930_v18 = vadd.f32 %v918_v17, %v899_v15  ;;  %v2192_v15 = vadd.f32 %v1564_v1, %v1024_v2  ;;  %v2194_v16 = vadd.f32 %v1178_v11, %v1019_v0 }
 0x1a5   : > { %v903_v19 = vpop.f32.mrf.mxu1 }
 0x1a6   : > { %v904_v20 = vadd.f32 %v903_v19, %v813_v10  ;;  %1647 = vtanh.f32 %v930_v18  ;;  %v1059_v17 = vpop.permute.xlu1 %1058  ;;  %v1064_v18 = vpop.permute.xlu0 %1063 }
 0x1a7   : > { %v1539_v22 = vpop.f32.mrf.mxu1 }
 0x1a8   : > { %v931_v23 = vadd.f32 %v923_v21, %v904_v20 }
 0x1a9   : > { %v908_v25 = vpop.f32.mrf.mxu1 }
 0x1aa   : > { %1649 = vtanh.f32 %v931_v23  ;;  %v909_v26 = vadd.f32 %v908_v25, %v818_v12 }
 0x1ab   : > { %v1542_v28 = vpop.f32.mrf.mxu1 }
 0x1ac   : > { %v932_v29 = vadd.f32 %v928_v27, %v909_v26  ;;  %v1228_v28 = vmax.f32 %v2188_v13, 0.0 }
 0x1ae   : > { %1651 = vtanh.f32 %v932_v29  ;;  %v1227_v29 = vmax.f32 %v2190_v14, 0.0 }
 0x1b1   : > { %v1567_v57 = vpop.f32.mrf.mxu1 }
 0x1b2   : > { %v1194_v19 = vadd.f32 %v1567_v57, %v1034_v6 }
 0x1b3   : > { %v1648_v31 = vpop.eup %1647  ;;  %v1188_v62 = vpop.f32.mrf.mxu1 }
 0x1b4   : > { %v954_v35 = vmul.f32 %v1648_v31, %v942_v30  ;;  %v1189_v20 = vadd.f32 %v1188_v62, %v1029_v5  ;;  %v1230_v30 = vmax.f32 %v2192_v15, 0.0  ;;  %v1229_v31 = vmax.f32 %v2194_v16, 0.0 }
 0x1b5   : > { %v1570_v3 = vpop.f32.mrf.mxu1 }
 0x1b6   : > { %v1204_v21 = vadd.f32 %v1570_v3, %v1044_v53 }
 0x1b7   : > { %v1650_v32 = vpop.eup %1649  ;;  %v1198_v7 = vpop.f32.mrf.mxu1 }
 0x1b8   : > { %v955_v34 = vmul.f32 %v1650_v32, %v947_v33  ;;  %v1199_v22 = vadd.f32 %v1198_v7, %v1039_v24  ;;  %v1232_v32 = vmax.f32 %v1194_v19, 0.0  ;;  %v1231_v33 = vmax.f32 %v1189_v20, 0.0 }
 0x1b9   : > { %v1573_v8 = vpop.f32.mrf.mxu1 }
 0x1ba   : > { %v957_v38 = vadd.f32 %v955_v34, %v954_v35  ;;  %v1214_v23 = vadd.f32 %v1573_v8, %v1054_v9  ;;  %v1234_v34 = vmax.f32 %v1204_v21, 0.0  ;;  %v1233_v35 = vmax.f32 %v1199_v22, 0.0 }
 0x1bb   : > { %v1652_v36 = vpop.eup %1651  ;;  %v1208_v63 = vpop.f32.mrf.mxu1 }
 0x1bc   : > { %v956_v39 = vmul.f32 %v1652_v36, %v952_v37  ;;  %v1209_v25 = vadd.f32 %v1208_v63, %v1049_v4  ;;  %v1236_v37 = vmax.f32 %v1214_v23, 0.0 }
 0x1bd   : > { %v1576_v10 = vpop.f32.mrf.mxu1 }
 0x1be   : > { %v958_v41 = vadd.f32 %v957_v38, %v956_v39  ;;  %v1224_v26 = vadd.f32 %v1576_v10, %v1064_v18  ;;  %v1235_v38 = vmax.f32 %v1209_v25, 0.0 }
 0x1bf   : > { %v1218_v12 = vpop.f32.mrf.mxu1 }
 0x1c0   : > { %v959_v42 = vrot.slane %v958_v41, 4  ;;  %v1219_v27 = vadd.f32 %v1218_v12, %v1059_v17  ;;  %v1238_v39 = vmax.f32 %v1224_v26, 0.0 }
 0x1c2   : > { %v960_v44 = vadd.f32 %v959_v42, %v958_v41  ;;  %v1237_v40 = vmax.f32 %v1219_v27, 0.0 }
 0x1c4   : > { %v961_v46 = vrot.slane %v960_v44, 2 }
 0x1c6   : > { %v962_v48 = vadd.f32 %v961_v46, %v960_v44 }
 0x1c8   : > { %v963_v50 = vrot.slane %v962_v48, 1 }
 0x1ca   : > { %v964_v56 = vadd.f32 %v963_v50, %v962_v48 }
 0x1cc   : > { %v975_v60 = vadd.f32 %v974_v52, %v964_v56 }
 0x1ce   : > { %v1422_v61 = vmul.f32 -1.442695, %v975_v60 }
 0x1d0   : > { %1653 = vpow2.f32 %v1422_v61 }
 0x1dd   : > { %v1654_v58 = vpop.eup %1653 }
 0x1de   : > { %v979_v59 = vadd.f32 1.0, %v1654_v58 }
 0x1e0   : > { %1655 = vrcp.f32 %v979_v59 }
 0x1ed   : > { %v1656_v36 = vpop.eup %1655 }
 0x1ee   : > { %v1244_v41 = vmul.f32 %v1656_v36, %v1232_v32  ;;  %v1243_v42 = vmul.f32 %v1656_v36, %v1231_v33  ;;  %v1246_v43 = vmul.f32 %v1656_v36, %v1234_v34  ;;  %v1245_v44 = vmul.f32 %v1656_v36, %v1233_v35  ;;  %1263 = vst [vmem:[%s585_s27] sm:$0x1] %v1656_v36 }
 0x1ef   : > { %v1248_v45 = vmul.f32 %v1656_v36, %v1236_v37  ;;  %v1247_v46 = vmul.f32 %v1656_v36, %v1235_v38  ;;  %v1250_v47 = vmul.f32 %v1656_v36, %v1238_v39  ;;  %v1249_v48 = vmul.f32 %v1656_v36, %v1237_v40 }
 0x1f0   : > { %1670 = shalt.err (!%p1667_p5)
}
 0x1f1   : > { %s1671_s27 = scalar_lea.hbm %s2211_s8, 16  ;;  %s1675_s18 = scalar_lea.hbm %s2308_s12, 32 }
 0x1f2   : > { %p1672_p7 = scmp.ne.s32.totalorder %s2211_s8, %s1671_s27  ;;  %p1676_p12 = scmp.lt.s32.totalorder %s2211_s8, %s2308_s12 }
 0x1f3   : > { %p1677_p13 = scmp.lt.s32.totalorder %s1675_s18, %s1671_s27 }
 0x1f4   : > { %p1673_p10 = pnand %p1672_p7, %p1868_p6 }
 0x1f5   : > { %p1678_p0 = por %p1677_p13, %p1676_p12 }
 0x1f6   : > { %p1674_p11 = pneg %p1673_p10 }
 0x1f8   : > { %p1679_p1 = pnand %p1678_p0, %p1674_p11 }
 0x1fa   : > { %1682 = shalt.err (!%p1679_p1)
}
 0x1fb   : > { %1596 = dma.vmem_to_hbm [thread:$0]  (%p1868_p6), %s2213_s17, 16, %s2211_s8, %s1270_s22   ;;  %1256 = vst [vmem:[%s2205_s20 + $0x28] sm:$0xff] %v1244_v41  ;;  %1255 = vst [vmem:[%s2205_s20 + $0x20] sm:$0xff] %v1243_v42  ;;  %v1239_v50 = vmul.f32 %v1656_v36, %v1227_v29  ;;  %v1240_v51 = vmul.f32 %v1656_v36, %v1228_v28  ;;  %v1241_v52 = vmul.f32 %v1656_v36, %v1229_v31 }
 0x1fc   : > { %1258 = vst [vmem:[%s2205_s20 + $0x38] sm:$0xff] %v1246_v43  ;;  %1257 = vst [vmem:[%s2205_s20 + $0x30] sm:$0xff] %v1245_v44  ;;  %v1242_v55 = vmul.f32 %v1656_v36, %v1230_v30  ;;  %s1265_s2 = scalar_lea.sflag [#allocation6], %s1902_s30  ;;  %s1683_s3 = scalar_lea.vmem %s2220_s14, 1536 }
 0x1fd   : > { %1260 = vst [vmem:[%s2205_s20 + $0x48] sm:$0xff] %v1248_v45  ;;  %1259 = vst [vmem:[%s2205_s20 + $0x40] sm:$0xff] %v1247_v46  ;;  %p1684_p2 = scmp.ne.s32.totalorder %s2220_s14, %s1683_s3  ;;  %s1753_s4 = smov [#allocation5]  }
 0x1fe   : > { %1262 = vst [vmem:[%s2205_s20 + $0x58] sm:$0xff] %v1250_v47  ;;  %1261 = vst [vmem:[%s2205_s20 + $0x50] sm:$0xff] %v1249_v48  ;;  %s1687_s17 = sshll.u32 %s1753_s4, 4  ;;  %s1688_s17 = int_to_ptr.vmem [resolvable:$false] %s1687_s17 }
 0x1ff   : > { %1251 = vst [vmem:[%s2205_s20] sm:$0xff] %v1239_v50  ;;  %1252 = vst [vmem:[%s2205_s20 + $0x8] sm:$0xff] %v1240_v51  ;;  %p1685_p3 = pnand %p1684_p2, %p1868_p6  ;;  %s1689_s8 = scalar_lea.vmem %s1688_s17, 3072 }
 0x200   : > { %1253 = vst [vmem:[%s2205_s20 + $0x10] sm:$0xff] %v1241_v52  ;;  %1254 = vst [vmem:[%s2205_s20 + $0x18] sm:$0xff] %v1242_v55  ;;  %p1690_p5 = scmp.lt.s32.totalorder %s2220_s14, %s1688_s17  ;;  %p1691_p7 = scmp.lt.s32.totalorder %s1689_s8, %s1683_s3 }
 0x201   : > { %p1686_p4 = pneg %p1685_p3 }
 0x202   : > { %p1692_p10 = por %p1691_p7, %p1690_p5 }
 0x204   : > { %p1693_p11 = pnand %p1692_p10, %p1686_p4 }
 0x206   : > { %1696 = shalt.err (!%p1693_p11)
}
 0x207   : > { %s1697_s20 = scalar_lea.hbm %s2218_s1, 1536  ;;  %s1701_s0 = scalar_lea.hbm %s2307_s11, 3072 }
 0x208   : > { %p1698_p12 = scmp.ne.s32.totalorder %s2218_s1, %s1697_s20  ;;  %p1702_p1 = scmp.lt.s32.totalorder %s2218_s1, %s2307_s11 }
 0x209   : > { %p1703_p2 = scmp.lt.s32.totalorder %s1701_s0, %s1697_s20 }
 0x20a   : > { %p1699_p13 = pnand %p1698_p12, %p1868_p6 }
 0x20b   : > { %p1704_p3 = por %p1703_p2, %p1702_p1 }
 0x20c   : > { %p1700_p0 = pneg %p1699_p13 }
 0x20e   : > { %p1705_p4 = pnand %p1704_p3, %p1700_p0 }
 0x210   : > { %1708 = shalt.err (!%p1705_p4)
}
 0x211   : > { %s1754_s19 = smov 128   ;;  %s1755_s18 = smov 256  }
 0x212   : > { %s1756_s3 = smov 8  }
 0x213   : > { %1595 = dma.vmem_to_hbm [thread:$0]  (%p1868_p6), %s2220_s14, 1536, %s2218_s1, %s1265_s2, %s1754_s19, %s1755_s18, %s1756_s3  }
 0x214 PF: > { %s1309_s4 = sand.u32 1, %s1735_s23   ;;  %p1600_p5 = pnand %p1410_p9, %p1872_p8 }
 0x215   : > { %s1310_s17 = scalar_lea.sflag [#allocation6], %s1309_s4 }
 0x216   : > { %p1601_p7 = pneg %p1600_p5 }
 0x218   : > { %1726 = dma.done.wait (%p1601_p7), %s1310_s17, 1536  }
 0x219   : > { %1728 = vsyncadd (%p1601_p7), %s1310_s17, 4294965760  ;;  %s1319_s8 = scalar_lea.sflag [#allocation8], %s1309_s4 }
 0x21a   : > { %1730 = dma.done.wait (%p1601_p7), %s1319_s8, 16  }
 0x21b   : > { %1732 = vsyncadd (%p1601_p7), %s1319_s8, 4294967280  ;;  %p28_p6 = scmp.ge.s32.totalorder %s1850_s28, 4   ;;  %s2324_s23 = smov %s1739_s24 }
 0x21c   : > { %s2325_s24 = smov %s1743_s25  ;;  %s2326_s25 = smov %s1862_s13 }
 0x21d   : > { %s2327_s26 = smov %s1850_s28  ;;  %30 = sbr.rel (!%p28_p6) target bundleno = 11 (0xb), region = 205 }
 0x222   :  { %1323 = vsyncpa [#allocation6], 1 }
 0x223   :  { %1325 = vsyncpa [#allocation6 + $0x1], 1 }
 0x224   :  { %1326 = vsyncpa [#allocation8], 1 }
 0x225   :  { %1328 = vsyncpa [#allocation8 + $0x1], 1 }

</bundles_post_ra>
